<compile_context>
chip_gen: v7x
topology: tpu7x:2x2x1
jax: 0.10.0
libtpu: 0.0.40
codegen_flags: <defaults>
</compile_context>

<pallas_src>
import functools

import jax
import jax.numpy as jnp
from jax import lax
from jax.experimental import pallas as pl
from jax.experimental.pallas import tpu as pltpu


def _label_smoothing_kernel(logits_ref, target_ref, out_ref, acc_ref, *,
                            smoothing, ignore_index, total_rows, tm,
                            blocks_per_split):
    c = pl.program_id(0)   # core / split axis ("parallel")
    j = pl.program_id(1)   # row-block axis within the split ("arbitrary")

    @pl.when(j == 0)
    def _():
        acc_ref[...] = jnp.zeros_like(acc_ref)

    x = logits_ref[...].astype(jnp.float32)        # (tm, C)
    t = target_ref[...]                            # (tm, 1) int32
    C = x.shape[1]
    eps = smoothing / (C - 1)

    # Per-row log-softmax statistics without materializing logp:
    #   logp_j  = x_j - m - lse
    #   logp_t  = x_t - m - lse
    #   sum_j logp_j = sum_j x_j - C*(m + lse)
    m = jnp.max(x, axis=1, keepdims=True)                          # (tm, 1)
    s1 = jnp.sum(x, axis=1, keepdims=True)                         # (tm, 1)
    lse = jnp.log(jnp.sum(jnp.exp(x - m), axis=1, keepdims=True))  # (tm, 1)
    col = lax.broadcasted_iota(jnp.int32, x.shape, 1)
    x_t = jnp.sum(jnp.where(col == t, x, 0.0), axis=1, keepdims=True)  # (tm,1)

    logp_t = x_t - m - lse
    sum_logp = s1 - jnp.float32(C) * (m + lse)
    row_loss = -(eps * (sum_logp - logp_t) + (1.0 - smoothing) * logp_t)

    # Mask ignored targets AND rows past N (remainder block / clamped blocks).
    block_idx = c * blocks_per_split + j
    row_id = block_idx * tm + lax.broadcasted_iota(jnp.int32, (x.shape[0], 1), 0)
    keep = jnp.logical_and(t != ignore_index, row_id < total_rows)

    acc_ref[...] += jnp.where(keep, row_loss, 0.0)

    @pl.when(j == pl.num_programs(1) - 1)
    def _():
        # Single cross-sublane reduction per split; division happens outside.
        out_ref[...] = jnp.sum(acc_ref[...], axis=0, keepdims=True)[None]


def label_smoothing_loss(logits, target, *, smoothing=0.1, ignore_index=-100,
                         tm=None, target_block_bytes=4 * 1024 * 1024):
    """logits: (N, C) f32/bf16, target: (N,) int32. Returns scalar f32 loss."""
    N, C = logits.shape
    itemsize = jnp.dtype(logits.dtype).itemsize

    # Pick a row tile that makes each logits block a multi-MiB DMA, capped so
    # double-buffered inputs + the (tm,1)-padded accumulator stay well inside
    # the 48 MiB scoped VMEM limit (safe on v5e/v6e/v7x).
    if tm is None:
        tm = max(8, target_block_bytes // (C * itemsize))
        tm = min(int(tm), 8192)
    tm = int(tm)
    if tm >= N:
        tm = N                       # full-extent row block (always legal)
    else:
        tm = max(8, tm - tm % 8)     # keep the sublane (8) divisibility rule

    total_blocks = pl.cdiv(N, tm)
    n_splits = 2 if total_blocks >= 2 else 1     # 2 TCs on v7x; serial elsewhere
    bps = pl.cdiv(total_blocks, n_splits)        # row blocks per split

    target2d = target.reshape(N, 1).astype(jnp.int32)

    def row_block_map(c, j):
        # Clamp so the DMA never reads outside the array; the kernel masks the
        # duplicated/out-of-range rows via row_id >= N, so no double counting.
        return (jnp.minimum(c * bps + j, total_blocks - 1), 0)

    kernel = functools.partial(
        _label_smoothing_kernel,
        smoothing=float(smoothing),
        ignore_index=int(ignore_index),
        total_rows=int(N),
        tm=tm,
        blocks_per_split=int(bps),
    )

    partials = pl.pallas_call(
        kernel,
        out_shape=jax.ShapeDtypeStruct((n_splits, 1, 1), jnp.float32),
        grid_spec=pltpu.PrefetchScalarGridSpec(
            num_scalar_prefetch=0,
            grid=(n_splits, bps),
            in_specs=[
                pl.BlockSpec((tm, C), row_block_map),
                pl.BlockSpec((tm, 1), row_block_map),
            ],
            out_specs=pl.BlockSpec((1, 1, 1), lambda c, j: (c, 0, 0)),
            scratch_shapes=[pltpu.VMEM((tm, 1), jnp.float32)],
        ),
        compiler_params=pltpu.CompilerParams(
            dimension_semantics=("parallel", "arbitrary"),
            vmem_limit_bytes=48 * 1024 * 1024,
        ),
    )(logits, target2d)

    # Mean over ALL N rows (ignored rows count in the denominator), as in the
    # PyTorch reference's torch.mean.
    return jnp.sum(partials) / jnp.float32(N)


def _reference(logits, target, smoothing=0.1, ignore_index=-100):
    """Pure-JAX mirror of the PyTorch module for verification."""
    N, C = logits.shape
    logp = jax.nn.log_softmax(logits.astype(jnp.float32), axis=1)
    eps = smoothing / (C - 1)
    true_dist = jnp.full((N, C), eps, jnp.float32)
    onehot = jax.nn.one_hot(target, C, dtype=jnp.float32)
    true_dist = jnp.where(onehot > 0, 1.0 - smoothing, true_dist)
    ignore = (target == ignore_index)[:, None]
    true_dist = jnp.where(ignore, 0.0, true_dist)
    logp = jnp.where(ignore, 0.0, logp)
    return jnp.mean(jnp.sum(-true_dist * logp, axis=1))


if __name__ == "__main__":
    key = jax.random.PRNGKey(0)
    k1, k2, k3, k4, k5, k6 = jax.random.split(key, 6)

    # Case 1: lane-aligned C, tm=8 forces the (parallel, arbitrary) grid path.
    N1, C1 = 16, 128
    logits1 = jax.random.normal(k1, (N1, C1), dtype=jnp.float32)
    target1 = jax.random.randint(k2, (N1,), 0, C1, dtype=jnp.int32)
    target1 = target1.at[3].set(-100).at[11].set(-100)
    loss1 = jax.block_until_ready(label_smoothing_loss(logits1, target1, tm=8))
    ref1 = _reference(logits1, target1)
    assert jnp.allclose(loss1, ref1, rtol=1e-4, atol=1e-4), (loss1, ref1)

    # Case 2: ragged N (remainder block + clamped index map) and C not a
    # multiple of 128.
    N2, C2 = 20, 96
    logits2 = jax.random.normal(k3, (N2, C2), dtype=jnp.float32)
    target2 = jax.random.randint(k4, (N2,), 0, C2, dtype=jnp.int32)
    target2 = target2.at[0].set(-100)
    loss2 = jax.block_until_ready(label_smoothing_loss(logits2, target2, tm=8))
    ref2 = _reference(logits2, target2)
    assert jnp.allclose(loss2, ref2, rtol=1e-4, atol=1e-4), (loss2, ref2)

    # Case 3: bf16 logits (halved HBM bytes), f32 compute inside the kernel.
    N3, C3 = 32, 128
    logits3 = jax.random.normal(k5, (N3, C3), dtype=jnp.float32).astype(jnp.bfloat16)
    target3 = jax.random.randint(k6, (N3,), 0, C3, dtype=jnp.int32)
    target3 = target3.at[5].set(-100)
    loss3 = jax.block_until_ready(label_smoothing_loss(logits3, target3, tm=16))
    ref3 = _reference(logits3.astype(jnp.float32), target3)
    assert jnp.allclose(loss3, ref3, rtol=1e-4, atol=1e-4), (loss3, ref3)

    # Case 4: default (auto) tile selection on a small input (single block).
    loss4 = jax.block_until_ready(label_smoothing_loss(logits1, target1))
    assert jnp.allclose(loss4, ref1, rtol=1e-4, atol=1e-4), (loss4, ref1)

    print("KERNEL_OK")
</pallas_src>

<mosaic_0001>
module attributes {stable_mosaic.version = 11 : i64} {
  func.func @_label_smoothing_kernel(%arg0: i32, %arg1: i32, %arg2: memref<8x128xf32, #tpu.memory_space<vmem>>, %arg3: memref<8x1xi32, #tpu.memory_space<vmem>>, %arg4: memref<1x1x1xf32, #tpu.memory_space<vmem>>, %arg5: memref<8x1xf32, #tpu.memory_space<vmem>>) attributes {dimension_semantics = [#tpu.dimension_semantics<parallel>, #tpu.dimension_semantics<arbitrary>], iteration_bounds = array<i64: 2, 1>, scalar_prefetch = 0 : i64, scratch_operands = 1 : i64, tpu.core_type = #tpu.core_type<tc>, window_params = [{transform_indices = @transform_0, window_bounds = array<i64: 8, 128>}, {transform_indices = @transform_1, window_bounds = array<i64: 8, 1>}, {transform_indices = @transform_2, window_bounds = array<i64: 1, 1, 1>}]} {
    %c0_i32 = arith.constant 0 : i32
    %0 = arith.cmpi eq, %arg1, %c0_i32 : i32
    %1 = arith.extui %0 : i1 to i32
    %c0_i32_0 = arith.constant 0 : i32
    %2 = arith.cmpi ne, %1, %c0_i32_0 : i32
    scf.if %2 {
      %cst_19 = arith.constant 0.000000e+00 : f32
      %55 = vector.broadcast %cst_19 : f32 to vector<8x1xf32>
      %c0_20 = arith.constant 0 : index
      %c0_21 = arith.constant 0 : index
      %56 = vector.load %arg5[%c0_20, %c0_21] : memref<8x1xf32, #tpu.memory_space<vmem>>, vector<8x1xf32>
      tpu.vector_store %arg5[%c0_20, %c0_21], %55 {strides = array<i32>} : memref<8x1xf32, #tpu.memory_space<vmem>>, vector<8x1xf32>,
    } else {
    }
    %c0 = arith.constant 0 : index
    %c0_1 = arith.constant 0 : index
    %3 = vector.load %arg2[%c0, %c0_1] : memref<8x128xf32, #tpu.memory_space<vmem>>, vector<8x128xf32>
    %c0_2 = arith.constant 0 : index
    %c0_3 = arith.constant 0 : index
    %4 = vector.load %arg3[%c0_2, %c0_3] : memref<8x1xi32, #tpu.memory_space<vmem>>, vector<8x1xi32>
    %cst = arith.constant dense<0xFF800000> : vector<8xf32>
    %5 = vector.multi_reduction <maximumf>, %3, %cst [1] : vector<8x128xf32> to vector<8xf32>
    %6 = vector.shape_cast %5 : vector<8xf32> to vector<8x1xf32>
    %cst_4 = arith.constant dense<0.000000e+00> : vector<8xf32>
    %7 = vector.multi_reduction <add>, %3, %cst_4 [1] : vector<8x128xf32> to vector<8xf32>
    %8 = vector.shape_cast %7 : vector<8xf32> to vector<8x1xf32>
    %9 = vector.broadcast %6 : vector<8x1xf32> to vector<8x128xf32>
    %10 = arith.subf %3, %9 : vector<8x128xf32>
    %11 = math.exp %10 : vector<8x128xf32>
    %cst_5 = arith.constant dense<0.000000e+00> : vector<8xf32>
    %12 = vector.multi_reduction <add>, %11, %cst_5 [1] : vector<8x128xf32> to vector<8xf32>
    %13 = vector.shape_cast %12 : vector<8xf32> to vector<8x1xf32>
    %14 = math.log %13 : vector<8x1xf32>
    %15 = tpu.iota {dimensions = array<i32: 1>} : vector<8x128xi32>
    %16 = vector.broadcast %4 : vector<8x1xi32> to vector<8x128xi32>
    %17 = arith.cmpi eq, %15, %16 : vector<8x128xi32>
    %cst_6 = arith.constant 0.000000e+00 : f32
    %18 = vector.broadcast %cst_6 : f32 to vector<8x128xf32>
    %19 = arith.select %17, %3, %18 : vector<8x128xi1>, vector<8x128xf32>
    %cst_7 = arith.constant dense<0.000000e+00> : vector<8xf32>
    %20 = vector.multi_reduction <add>, %19, %cst_7 [1] : vector<8x128xf32> to vector<8xf32>
    %21 = vector.shape_cast %20 : vector<8xf32> to vector<8x1xf32>
    %22 = arith.subf %21, %6 : vector<8x1xf32>
    %23 = arith.subf %22, %14 : vector<8x1xf32>
    %24 = arith.addf %6, %14 : vector<8x1xf32>
    %cst_8 = arith.constant 1.280000e+02 : f32
    %25 = vector.broadcast %cst_8 : f32 to vector<8x1xf32>
    %26 = arith.mulf %25, %24 : vector<8x1xf32>
    %27 = arith.subf %8, %26 : vector<8x1xf32>
    %28 = arith.subf %27, %23 : vector<8x1xf32>
    %cst_9 = arith.constant 7.87401571E-4 : f32
    %29 = vector.broadcast %cst_9 : f32 to vector<8x1xf32>
    %30 = arith.mulf %29, %28 : vector<8x1xf32>
    %cst_10 = arith.constant 0.899999976 : f32
    %31 = vector.broadcast %cst_10 : f32 to vector<8x1xf32>
    %32 = arith.mulf %31, %23 : vector<8x1xf32>
    %33 = arith.addf %30, %32 : vector<8x1xf32>
    %cst_11 = arith.constant 0.000000e+00 : f32
    %34 = vector.broadcast %cst_11 : f32 to vector<8x1xf32>
    %35 = arith.subf %34, %33 : vector<8x1xf32>
    %c1_i32 = arith.constant 1 : i32
    %36 = arith.muli %arg0, %c1_i32 : i32
    %37 = arith.addi %36, %arg1 : i32
    %c8_i32 = arith.constant 8 : i32
    %38 = arith.muli %37, %c8_i32 : i32
    %39 = tpu.iota {dimensions = array<i32: 0>} : vector<8x1xi32>
    %40 = vector.broadcast %38 : i32 to vector<8x1xi32>
    %41 = arith.addi %40, %39 : vector<8x1xi32>
    %c-100_i32 = arith.constant -100 : i32
    %42 = vector.broadcast %c-100_i32 : i32 to vector<8x1xi32>
    %43 = arith.cmpi ne, %4, %42 : vector<8x1xi32>
    %c16_i32 = arith.constant 16 : i32
    %44 = vector.broadcast %c16_i32 : i32 to vector<8x1xi32>
    %45 = arith.cmpi slt, %41, %44 : vector<8x1xi32>
    %46 = arith.andi %43, %45 : vector<8x1xi1>
    %c0_12 = arith.constant 0 : index
    %c0_13 = arith.constant 0 : index
    %47 = vector.load %arg5[%c0_12, %c0_13] : memref<8x1xf32, #tpu.memory_space<vmem>>, vector<8x1xf32>
    %cst_14 = arith.constant 0.000000e+00 : f32
    %48 = vector.broadcast %cst_14 : f32 to vector<8x1xf32>
    %49 = arith.select %46, %35, %48 : vector<8x1xi1>, vector<8x1xf32>
    %50 = arith.addf %47, %49 : vector<8x1xf32>
    %c0_15 = arith.constant 0 : index
    %c0_16 = arith.constant 0 : index
    %51 = vector.load %arg5[%c0_15, %c0_16] : memref<8x1xf32, #tpu.memory_space<vmem>>, vector<8x1xf32>
    tpu.vector_store %arg5[%c0_15, %c0_16], %50 {strides = array<i32>} : memref<8x1xf32, #tpu.memory_space<vmem>>, vector<8x1xf32>,
    %c0_i32_17 = arith.constant 0 : i32
    %52 = arith.cmpi eq, %arg1, %c0_i32_17 : i32
    %53 = arith.extui %52 : i1 to i32
    %c0_i32_18 = arith.constant 0 : i32
    %54 = arith.cmpi ne, %53, %c0_i32_18 : i32
    scf.if %54 {
      %c0_19 = arith.constant 0 : index
      %c0_20 = arith.constant 0 : index
      %55 = vector.load %arg5[%c0_19, %c0_20] : memref<8x1xf32, #tpu.memory_space<vmem>>, vector<8x1xf32>
      %cst_21 = arith.constant dense<0.000000e+00> : vector<1xf32>
      %56 = vector.multi_reduction <add>, %55, %cst_21 [0] : vector<8x1xf32> to vector<1xf32>
      %57 = vector.shape_cast %56 : vector<1xf32> to vector<1x1xf32>
      %58 = vector.shape_cast %57 : vector<1x1xf32> to vector<1x1x1xf32>
      %c0_22 = arith.constant 0 : index
      %c0_23 = arith.constant 0 : index
      %c0_24 = arith.constant 0 : index
      %59 = vector.load %arg4[%c0_22, %c0_23, %c0_24] : memref<1x1x1xf32, #tpu.memory_space<vmem>>, vector<1x1x1xf32>
      tpu.vector_store %arg4[%c0_22, %c0_23, %c0_24], %58 {strides = array<i32>} : memref<1x1x1xf32, #tpu.memory_space<vmem>>, vector<1x1x1xf32>,
    } else {
    }
    return
  }
  func.func @transform_0(%arg0: i32, %arg1: i32) -> (i32, i32) {
    %c1_i32 = arith.constant 1 : i32
    %0 = arith.muli %arg0, %c1_i32 : i32
    %1 = arith.addi %0, %arg1 : i32
    %c1_i32_0 = arith.constant 1 : i32
    %2 = arith.minsi %1, %c1_i32_0 : i32
    %c0_i32 = arith.constant 0 : i32
    %c0_i32_1 = arith.constant 0 : i32
    return %2, %c0_i32 : i32, i32
  }
  func.func @transform_1(%arg0: i32, %arg1: i32) -> (i32, i32) {
    %c1_i32 = arith.constant 1 : i32
    %0 = arith.muli %arg0, %c1_i32 : i32
    %1 = arith.addi %0, %arg1 : i32
    %c1_i32_0 = arith.constant 1 : i32
    %2 = arith.minsi %1, %c1_i32_0 : i32
    %c0_i32 = arith.constant 0 : i32
    %c0_i32_1 = arith.constant 0 : i32
    return %2, %c0_i32 : i32, i32
  }
  func.func @transform_2(%arg0: i32, %arg1: i32) -> (i32, i32, i32) {
    %c0_i32 = arith.constant 0 : i32
    %c0_i32_0 = arith.constant 0 : i32
    %c0_i32_1 = arith.constant 0 : i32
    return %arg0, %c0_i32, %c0_i32_0 : i32, i32, i32
  }
}

</mosaic_0001>

<bundles_post_ra>
// kernel: tpu_custom_call.1
= control target key start
LH: loop header
LB: loop body
LE: loop exit
PB: predicated region body
PF: predicated region fallthrough
CT: control target
= control target key end

     0   :  { %s428_s9 = smov 0   ;;  %s430_s10 = smov 0   ;;  %s477_s0 = inlined_call_operand.vmem [shape: f32[16,128], index: 0, kind: input, shape index: {}]   ;;  %s478_s1 = inlined_call_operand.vmem [shape: s32[16,1], index: 1, kind: input, shape index: {}]   ;;  %s479_s2 = inlined_call_operand.vmem [shape: f32[2,1,1], index: 2, kind: output, shape index: {}]  }
   0x1   :  { %s432_s11 = smov 0  }
   0x2 LB: > { %s24_s12 = sadd.s32 1, %s405_s10  ;;  %p344_p0 = scmp.ge.s32.totalorder %s409_s11, 1  ;;  %s409_s11 = sphi %s432_s11, %s12_s11   ;;  %s405_s10 = sphi %s430_s10, %s483_s10   ;;  %s401_s9 = sphi %s428_s9, %s482_s9  }
   0x3   : > { %p26_p1 = scmp.ge.s32.totalorder %s24_s12, 2  ;;  %p156_p2 = scmp.lt.s32.totalorder %s409_s11, 3 }
   0x5   : > { %s485_s12 = smov (%p26_p1, %s24_s12), 0  ;;  %p157_p3 = pnand %p344_p0, %p156_p2 }
   0x6   : > { %p186_p4 = scmp.lt.s32.totalorder (!%p157_p3), %s401_s9, 1  ;;  %v227_v0 = vlaneseq (!%p157_p3)  ;;  %s353_s13 = sshll.u32 (!%p157_p3), %s401_s9, 3  ;;  %v411_v1 = vmov (!%p157_p3), 0   ;;  %vm212_vm4 = vcmask (!%p157_p3), 7168   ;;  %v412_v15 = vmov (!%p157_p3), 0.0  }
   0x7   : > { %160 = sbr.rel (%p157_p3) target bundleno = 371 (0x173), region = 28  ;;  %382 = vset.pattern.permute.xlu0 (!%p157_p3), %v411_v1  ;;  %v250_v2 = vstv (!%p157_p3), %s353_s13  ;;  %213 = vst.msk [vmem:[#allocation2] sm:$0xff] (!%p157_p3), %vm212_vm4, %v412_v15  ;;  %vm271_vm5 = vcmask (!%p157_p3), 0  }
   0x8   : > { %v249_v3 = vshrl.u32 (!%p157_p3), %v227_v0, 7  ;;  %v228_v11 = vand.u32 (!%p157_p3), 127, %v227_v0 }
   0xa   : > { %v251_v4 = vadd.s32 (!%p157_p3), %v250_v2, %v249_v3 }
   0xc   : > { %vm253_vm0 = vcmp.lt.s32.totalorder (!%p157_p3), %v251_v4, 16 }
   0xe   : > { %s487_s9 = smov (!%p186_p4, %s401_s9), 1  ;;  %v255_v30 = vld [vmem:[#allocation2] sm:$0xff] }
   0xf   : > { %s189_s14 = scalar_select %p186_p4, %s487_s9, 1 }
  0x10   : > { %s207_s24 = scalar_lea.vmem %s479_s2, %s487_s9 }
  0x11   : > { %s348_s15 = sshll.u32 %s189_s14, 3 }
  0x12   : > { %s191_s18 = scalar_lea.vmem %s477_s0, %s348_s15  ;;  %s201_s21 = scalar_lea.vmem %s478_s1, %s348_s15 }
  0x13   : > { %v214_v5 = vld [vmem:[%s191_s18] sm:$0xff] }
  0x14   : > { %v215_v6 = vld [vmem:[%s201_s21] sm:$0xff]  ;;  %216 = vmax.xlane.f32.xlu0 %v214_v5 }
  0x15   : > { %vm252_vm1 = vcmp.ne.s32.totalorder %v215_v6, 4294967196 }
  0x16   : > { %vm455_vm2 = vmand %vm252_vm1, %vm253_vm0 }
  0x2a   : > { %230 = vperm.xlu0 %382, %v215_v6  }
  0xa1   : > { %v217_v8 = vpop.xlane.xlu0 %216 }
  0xa2   : > { %v220_v9 = vsub.f32 %v214_v5, %v217_v8 }
  0xa4   : > { %v221_v10 = vmul.f32 1.442695, %v220_v9 }
  0xa6   : > { %383 = vpow2.f32 %v221_v10 }
  0xa9   : > { %v231_v12 = vpop.permute.xlu0 %230 }
  0xaa   : > { %vm232_vm3 = vcmp.eq.s32.totalorder %v228_v11, %v231_v12 }
  0xab   : > { %v233_v14 = vsel %vm232_vm3, %v214_v5, 0.0 }
  0xb0   : > { %v384_v13 = vpop.eup %383 }
  0xb1   : > { %223 = vadd.xlane.f32.xlu1 %v384_v13 }
  0xb5   : > { %234 = vadd.xlane.f32.xlu1 %v233_v14 }
  0xb9   : > { %218 = vadd.xlane.f32.xlu1 %v214_v5 }
 0x13e   : > { %v224_v16 = vpop.xlane.xlu1 %223 }
 0x13f   : > { %385 = vlog2.f32 %v224_v16 }
 0x142   : > { %v235_v18 = vpop.xlane.xlu1 %234 }
 0x143   : > { %v236_v22 = vsub.f32 %v235_v18, %v217_v8 }
 0x146   : > { %v219_v21 = vpop.xlane.xlu1 %218 }
 0x149   : > { %v386_v17 = vpop.eup %385 }
 0x14a   : > { %v226_v19 = vmul.f32 0.6931472, %v386_v17 }
 0x14c   : > { %v238_v20 = vadd.f32 %v226_v19, %v217_v8  ;;  %v237_v24 = vsub.f32 %v236_v22, %v226_v19 }
 0x14e   : > { %v239_v23 = vmul.f32 128.0, %v238_v20  ;;  %v243_v27 = vmul.f32 0.9, %v237_v24 }
 0x150   : > { %v240_v25 = vsub.f32 %v219_v21, %v239_v23 }
 0x152   : > { %v241_v26 = vsub.f32 %v240_v25, %v237_v24 }
 0x154   : > { %v242_v28 = vmul.f32 0.0007874016, %v241_v26 }
 0x156   : > { %v244_v29 = vadd.f32 %v243_v27, %v242_v28 }
 0x158   : > { %v245_v31 = vsub.f32 0.0, %v244_v29 }
 0x15a   : > { %v256_v32 = vsel %vm455_vm2, %v245_v31, 0.0 }
 0x15b   : > { %v257_v33 = vadd.f32 %v256_v32, %v255_v30 }
 0x15d   : > { %259 = vst.msk [vmem:[#allocation2] sm:$0xff] %vm212_vm4, %v257_v33 }
 0x164   : > { %v263_v34 = vld [vmem:[#allocation2] sm:$0xff] }
 0x165   : > { %v264_v35 = vsel %vm212_vm4, %v263_v34, 0.0 }
 0x166   : > { %v265_v36 = vrot.slane %v264_v35, 4 }
 0x168   : > { %v266_v37 = vadd.f32 %v265_v36, %v264_v35 }
 0x16a   : > { %v267_v38 = vrot.slane %v266_v37, 2 }
 0x16c   : > { %v268_v39 = vadd.f32 %v267_v38, %v266_v37 }
 0x16e   : > { %v269_v40 = vrot.slane %v268_v39, 1 }
 0x170   : > { %v270_v41 = vadd.f32 %v269_v40, %v268_v39 }
 0x172   : > { %272 = vst.msk [vmem:[%s207_s24] sm:$0x1] %vm271_vm5, %v270_v41 }
 0x173 PF: > { %s12_s11 = sadd.s32 1, %s409_s11   ;;  %s482_s9 = smov %s405_s10 }
 0x174   : > { %p9_p5 = scmp.ge.s32.totalorder %s12_s11, 4   ;;  %s483_s10 = smov %s485_s12 }
 0x176   :  { %11 = sbr.rel (!%p9_p5) target bundleno = 2 (0x2), region = 69 }

</bundles_post_ra>
